<compile_context>
chip_gen: v5e
topology: v5e:2x2
jax: 0.10.0
libtpu: 0.0.40
codegen_flags: <defaults>
</compile_context>

<pallas_src>
import jax
import jax.numpy as jnp
from jax.experimental import pallas as pl
from jax.experimental.pallas import tpu as pltpu

INPUT_WIDTH = 5
OUTPUT_WIDTH = 2
WIDTH = 4 * INPUT_WIDTH          # 20
HIDDEN = 10 * WIDTH              # 200
X_COLS = 9


def _round_up(n, m):
    return ((n + m - 1) // m) * m


def _silu_kernel(h):
    # h * sigmoid(h); exp and the approximate reciprocal both go to the EUP.
    return h * pl.reciprocal(1.0 + jnp.exp(-h), approx=True)


def flow_mlp_kernel(x_ref,
                    w1_ref, b1_ref,
                    w2_ref, b2_ref,
                    w3_ref, b3_ref,
                    w4_ref, b4_ref,
                    out_ref):
    # x_ref block: (9, TB) f32, rows already ordered [xt, y1, t, x0, x1].

    # ---- Layer 1 (5 -> 20) on the VPU: 5 broadcasted outer-product FMAs ----
    h = b1_ref[...]                                        # (20, 1), f32
    for k in range(INPUT_WIDTH):
        # (20,1) * (1,TB) -> (20,TB); lane-/sublane-broadcast + VPU mul/add.
        h = h + w1_ref[:, k:k + 1] * x_ref[k:k + 1, :]
    h = _silu_kernel(h)                                    # (20, TB) f32

    # ---- Layers 2-4 on the MXU: bf16 operands, f32 accumulation ------------
    h = jnp.dot(w2_ref[...], h.astype(jnp.bfloat16),
                preferred_element_type=jnp.float32) + b2_ref[...]
    h = _silu_kernel(h)                                    # (200, TB) f32
    h = jnp.dot(w3_ref[...], h.astype(jnp.bfloat16),
                preferred_element_type=jnp.float32) + b3_ref[...]
    h = _silu_kernel(h)                                    # (20, TB) f32
    v = jnp.dot(w4_ref[...], h.astype(jnp.bfloat16),
                preferred_element_type=jnp.float32) + b4_ref[...]  # (2, TB)

    # ---- dx = x1 - x0 as a pure VPU sublane-slice subtract -----------------
    dx = x_ref[7:9, :] - x_ref[5:7, :]                     # (2, TB) f32

    out_ref[0:OUTPUT_WIDTH, :] = v
    out_ref[OUTPUT_WIDTH:, :] = dx


def flow_mlp_forward(x, params, *, block_b=2048):
    """x: (B, 9) float32. Returns (v_pred (B,2), x1 - x0 (B,2))."""
    B = x.shape[0]
    TB = _round_up(min(block_b, _round_up(max(B, 1), 128)), 128)
    # Keep the grid at >= 2 steps when the batch allows it (v7x megacore).
    if _round_up(B, TB) // TB < 2 and B > 128:
        TB = _round_up((B + 1) // 2, 128)
    B_pad = _round_up(B, TB)

    # Feature-major x with rows pre-permuted to [xt(2), y1(2), t(1), x0(2), x1(2)].
    perm = jnp.array([7, 8, 4, 5, 6, 0, 1, 2, 3], dtype=jnp.int32)
    x_t = x[:, perm].T                                     # (9, B)
    if B_pad != B:
        x_t = jnp.pad(x_t, ((0, 0), (0, B_pad - B)))

    # Weights feature-major (out, in); MXU layers in bf16, VPU layer / biases f32.
    w1f = params["w1"].T.astype(jnp.float32)               # (20, 5)
    w2f = params["w2"].T.astype(jnp.bfloat16)              # (200, 20)
    w3f = params["w3"].T.astype(jnp.bfloat16)              # (20, 200)
    w4f = params["w4"].T.astype(jnp.bfloat16)              # (2, 20)
    b1f = params["b1"].T.astype(jnp.float32)               # (20, 1)
    b2f = params["b2"].T.astype(jnp.float32)               # (200, 1)
    b3f = params["b3"].T.astype(jnp.float32)               # (20, 1)
    b4f = params["b4"].T.astype(jnp.float32)               # (2, 1)

    grid = (B_pad // TB,)
    const = lambda i: (0, 0)                               # weights stay VMEM-resident

    out = pl.pallas_call(
        flow_mlp_kernel,
        out_shape=jax.ShapeDtypeStruct((2 * OUTPUT_WIDTH, B_pad), jnp.float32),
        grid=grid,
        in_specs=[
            pl.BlockSpec((X_COLS, TB), lambda i: (0, i)),  # lane-dense batch tile
            pl.BlockSpec(w1f.shape, const), pl.BlockSpec(b1f.shape, const),
            pl.BlockSpec(w2f.shape, const), pl.BlockSpec(b2f.shape, const),
            pl.BlockSpec(w3f.shape, const), pl.BlockSpec(b3f.shape, const),
            pl.BlockSpec(w4f.shape, const), pl.BlockSpec(b4f.shape, const),
        ],
        out_specs=pl.BlockSpec((2 * OUTPUT_WIDTH, TB), lambda i: (0, i)),
        compiler_params=pltpu.CompilerParams(
            dimension_semantics=("parallel",)),
    )(x_t, w1f, b1f, w2f, b2f, w3f, b3f, w4f, b4f)

    v_pred = out[:OUTPUT_WIDTH, :B].T
    dx = out[OUTPUT_WIDTH:, :B].T
    return v_pred, dx


def init_params(key):
    """Deterministic parameters matching nn.Linear shapes (stored as (in, out))."""
    dims = [(INPUT_WIDTH, WIDTH), (WIDTH, HIDDEN), (HIDDEN, WIDTH), (WIDTH, OUTPUT_WIDTH)]
    params = {}
    keys = jax.random.split(key, 2 * len(dims))
    for i, (fan_in, fan_out) in enumerate(dims):
        bound = 1.0 / (fan_in ** 0.5)  # PyTorch default uniform bound
        params[f"w{i + 1}"] = jax.random.uniform(
            keys[2 * i], (fan_in, fan_out), jnp.float32, -bound, bound)
        params[f"b{i + 1}"] = jax.random.uniform(
            keys[2 * i + 1], (1, fan_out), jnp.float32, -bound, bound)
    return params


def reference_forward(x, params):
    """Plain-JAX f32 reference of the same forward pass (for sanity checking)."""
    def silu(h):
        return h * jax.nn.sigmoid(h)
    xt, y1, t = x[:, 7:9], x[:, 4:6], x[:, 6:7]
    inp = jnp.concatenate([xt, y1, t], axis=-1)
    h = silu(inp @ params["w1"] + params["b1"])
    h = silu(h @ params["w2"] + params["b2"])
    h = silu(h @ params["w3"] + params["b3"])
    v = h @ params["w4"] + params["b4"]
    return v, x[:, 2:4] - x[:, 0:2]


if __name__ == "__main__":
    key = jax.random.PRNGKey(0)
    k_x, k_p = jax.random.split(key)

    B = 200                      # deliberately not a multiple of the batch tile
    x = jax.random.normal(k_x, (B, X_COLS), jnp.float32)
    params = init_params(k_p)

    fwd = jax.jit(flow_mlp_forward, static_argnames=("block_b",))
    # block_b=128 -> 2 grid steps: exercises batch tiling, resident weights,
    # tail padding/slicing, and the 2-core-friendly grid.
    v_pred, dx = fwd(x, params, block_b=128)
    v_pred, dx = jax.block_until_ready((v_pred, dx))

    v_ref, dx_ref = reference_forward(x, params)
    assert v_pred.shape == (B, OUTPUT_WIDTH) and dx.shape == (B, 2)
    # bf16 MXU operands + approx reciprocal -> loosened tolerance vs f32 ref.
    assert jnp.allclose(v_pred, v_ref, atol=7.5e-2, rtol=5e-2), \
        float(jnp.max(jnp.abs(v_pred - v_ref)))
    assert jnp.allclose(dx, dx_ref, atol=1e-5, rtol=1e-5)

    print("KERNEL_OK")
</pallas_src>

<mosaic_0001>
module attributes {stable_mosaic.version = 11 : i64} {
  func.func @flow_mlp_kernel(%arg0: i32, %arg1: memref<9x128xf32, #tpu.memory_space<vmem>>, %arg2: memref<20x5xf32, #tpu.memory_space<vmem>>, %arg3: memref<20x1xf32, #tpu.memory_space<vmem>>, %arg4: memref<200x20xbf16, #tpu.memory_space<vmem>>, %arg5: memref<200x1xf32, #tpu.memory_space<vmem>>, %arg6: memref<20x200xbf16, #tpu.memory_space<vmem>>, %arg7: memref<20x1xf32, #tpu.memory_space<vmem>>, %arg8: memref<2x20xbf16, #tpu.memory_space<vmem>>, %arg9: memref<2x1xf32, #tpu.memory_space<vmem>>, %arg10: memref<4x128xf32, #tpu.memory_space<vmem>>) attributes {dimension_semantics = [#tpu.dimension_semantics<parallel>], iteration_bounds = array<i64: 2>, scalar_prefetch = 0 : i64, scratch_operands = 0 : i64, tpu.core_type = #tpu.core_type<tc>, window_params = [{transform_indices = @transform_0, window_bounds = array<i64: 9, 128>}, {pipeline_mode = #tpu.pipeline_mode<synchronous>, transform_indices = @transform_1, window_bounds = array<i64: 20, 5>}, {pipeline_mode = #tpu.pipeline_mode<synchronous>, transform_indices = @transform_2, window_bounds = array<i64: 20, 1>}, {pipeline_mode = #tpu.pipeline_mode<synchronous>, transform_indices = @transform_3, window_bounds = array<i64: 200, 20>}, {pipeline_mode = #tpu.pipeline_mode<synchronous>, transform_indices = @transform_4, window_bounds = array<i64: 200, 1>}, {pipeline_mode = #tpu.pipeline_mode<synchronous>, transform_indices = @transform_5, window_bounds = array<i64: 20, 200>}, {pipeline_mode = #tpu.pipeline_mode<synchronous>, transform_indices = @transform_6, window_bounds = array<i64: 20, 1>}, {pipeline_mode = #tpu.pipeline_mode<synchronous>, transform_indices = @transform_7, window_bounds = array<i64: 2, 20>}, {pipeline_mode = #tpu.pipeline_mode<synchronous>, transform_indices = @transform_8, window_bounds = array<i64: 2, 1>}, {transform_indices = @transform_9, window_bounds = array<i64: 4, 128>}]} {
    %c0 = arith.constant 0 : index
    %c0_0 = arith.constant 0 : index
    %0 = vector.load %arg3[%c0, %c0_0] : memref<20x1xf32, #tpu.memory_space<vmem>>, vector<20x1xf32>
    %c0_1 = arith.constant 0 : index
    %c0_2 = arith.constant 0 : index
    %1 = vector.load %arg2[%c0_1, %c0_2] : memref<20x5xf32, #tpu.memory_space<vmem>>, vector<20x1xf32>
    %c0_3 = arith.constant 0 : index
    %c0_4 = arith.constant 0 : index
    %2 = vector.load %arg1[%c0_3, %c0_4] : memref<9x128xf32, #tpu.memory_space<vmem>>, vector<1x128xf32>
    %3 = vector.broadcast %1 : vector<20x1xf32> to vector<20x128xf32>
    %4 = vector.broadcast %2 : vector<1x128xf32> to vector<20x128xf32>
    %5 = arith.mulf %3, %4 : vector<20x128xf32>
    %6 = vector.broadcast %0 : vector<20x1xf32> to vector<20x128xf32>
    %7 = arith.addf %6, %5 : vector<20x128xf32>
    %c0_5 = arith.constant 0 : index
    %c1 = arith.constant 1 : index
    %8 = vector.load %arg2[%c0_5, %c1] : memref<20x5xf32, #tpu.memory_space<vmem>>, vector<20x1xf32>
    %c1_6 = arith.constant 1 : index
    %c0_7 = arith.constant 0 : index
    %9 = vector.load %arg1[%c1_6, %c0_7] : memref<9x128xf32, #tpu.memory_space<vmem>>, vector<1x128xf32>
    %10 = vector.broadcast %8 : vector<20x1xf32> to vector<20x128xf32>
    %11 = vector.broadcast %9 : vector<1x128xf32> to vector<20x128xf32>
    %12 = arith.mulf %10, %11 : vector<20x128xf32>
    %13 = arith.addf %7, %12 : vector<20x128xf32>
    %c0_8 = arith.constant 0 : index
    %c2 = arith.constant 2 : index
    %14 = vector.load %arg2[%c0_8, %c2] : memref<20x5xf32, #tpu.memory_space<vmem>>, vector<20x1xf32>
    %c2_9 = arith.constant 2 : index
    %c0_10 = arith.constant 0 : index
    %15 = vector.load %arg1[%c2_9, %c0_10] : memref<9x128xf32, #tpu.memory_space<vmem>>, vector<1x128xf32>
    %16 = vector.broadcast %14 : vector<20x1xf32> to vector<20x128xf32>
    %17 = vector.broadcast %15 : vector<1x128xf32> to vector<20x128xf32>
    %18 = arith.mulf %16, %17 : vector<20x128xf32>
    %19 = arith.addf %13, %18 : vector<20x128xf32>
    %c0_11 = arith.constant 0 : index
    %c3 = arith.constant 3 : index
    %20 = vector.load %arg2[%c0_11, %c3] : memref<20x5xf32, #tpu.memory_space<vmem>>, vector<20x1xf32>
    %c3_12 = arith.constant 3 : index
    %c0_13 = arith.constant 0 : index
    %21 = vector.load %arg1[%c3_12, %c0_13] : memref<9x128xf32, #tpu.memory_space<vmem>>, vector<1x128xf32>
    %22 = vector.broadcast %20 : vector<20x1xf32> to vector<20x128xf32>
    %23 = vector.broadcast %21 : vector<1x128xf32> to vector<20x128xf32>
    %24 = arith.mulf %22, %23 : vector<20x128xf32>
    %25 = arith.addf %19, %24 : vector<20x128xf32>
    %c0_14 = arith.constant 0 : index
    %c4 = arith.constant 4 : index
    %26 = vector.load %arg2[%c0_14, %c4] : memref<20x5xf32, #tpu.memory_space<vmem>>, vector<20x1xf32>
    %c4_15 = arith.constant 4 : index
    %c0_16 = arith.constant 0 : index
    %27 = vector.load %arg1[%c4_15, %c0_16] : memref<9x128xf32, #tpu.memory_space<vmem>>, vector<1x128xf32>
    %28 = vector.broadcast %26 : vector<20x1xf32> to vector<20x128xf32>
    %29 = vector.broadcast %27 : vector<1x128xf32> to vector<20x128xf32>
    %30 = arith.mulf %28, %29 : vector<20x128xf32>
    %31 = arith.addf %25, %30 : vector<20x128xf32>
    %cst = arith.constant 0.000000e+00 : f32
    %32 = vector.broadcast %cst : f32 to vector<20x128xf32>
    %33 = arith.subf %32, %31 : vector<20x128xf32>
    %34 = math.exp %33 : vector<20x128xf32>
    %cst_17 = arith.constant 1.000000e+00 : f32
    %35 = vector.broadcast %cst_17 : f32 to vector<20x128xf32>
    %36 = arith.addf %35, %34 : vector<20x128xf32>
    %37 = tpu.reciprocal %36 {approx = true} : vector<20x128xf32> -> vector<20x128xf32>
    %38 = arith.mulf %31, %37 : vector<20x128xf32>
    %c0_18 = arith.constant 0 : index
    %c0_19 = arith.constant 0 : index
    %39 = vector.load %arg4[%c0_18, %c0_19] : memref<200x20xbf16, #tpu.memory_space<vmem>>, vector<200x20xbf16>
    %40 = arith.truncf %38 : vector<20x128xf32> to vector<20x128xbf16>
    %cst_20 = arith.constant dense<0.000000e+00> : vector<200x128xf32>
    %41 = tpu.matmul %39, %40, %cst_20 {dimension_numbers = #tpu.dot_dimension_numbers<[1], [0], [0], [1], [0, 0, 1, 1], [], []>} : vector<200x20xbf16>, vector<20x128xbf16>, vector<200x128xf32> -> vector<200x128xf32>
    %c0_21 = arith.constant 0 : index
    %c0_22 = arith.constant 0 : index
    %42 = vector.load %arg5[%c0_21, %c0_22] : memref<200x1xf32, #tpu.memory_space<vmem>>, vector<200x1xf32>
    %43 = vector.broadcast %42 : vector<200x1xf32> to vector<200x128xf32>
    %44 = arith.addf %41, %43 : vector<200x128xf32>
    %cst_23 = arith.constant 0.000000e+00 : f32
    %45 = vector.broadcast %cst_23 : f32 to vector<200x128xf32>
    %46 = arith.subf %45, %44 : vector<200x128xf32>
    %47 = math.exp %46 : vector<200x128xf32>
    %cst_24 = arith.constant 1.000000e+00 : f32
    %48 = vector.broadcast %cst_24 : f32 to vector<200x128xf32>
    %49 = arith.addf %48, %47 : vector<200x128xf32>
    %50 = tpu.reciprocal %49 {approx = true} : vector<200x128xf32> -> vector<200x128xf32>
    %51 = arith.mulf %44, %50 : vector<200x128xf32>
    %c0_25 = arith.constant 0 : index
    %c0_26 = arith.constant 0 : index
    %52 = vector.load %arg6[%c0_25, %c0_26] : memref<20x200xbf16, #tpu.memory_space<vmem>>, vector<20x200xbf16>
    %53 = arith.truncf %51 : vector<200x128xf32> to vector<200x128xbf16>
    %cst_27 = arith.constant dense<0.000000e+00> : vector<20x128xf32>
    %54 = tpu.matmul %52, %53, %cst_27 {dimension_numbers = #tpu.dot_dimension_numbers<[1], [0], [0], [1], [0, 0, 1, 1], [], []>} : vector<20x200xbf16>, vector<200x128xbf16>, vector<20x128xf32> -> vector<20x128xf32>
    %c0_28 = arith.constant 0 : index
    %c0_29 = arith.constant 0 : index
    %55 = vector.load %arg7[%c0_28, %c0_29] : memref<20x1xf32, #tpu.memory_space<vmem>>, vector<20x1xf32>
    %56 = vector.broadcast %55 : vector<20x1xf32> to vector<20x128xf32>
    %57 = arith.addf %54, %56 : vector<20x128xf32>
    %cst_30 = arith.constant 0.000000e+00 : f32
    %58 = vector.broadcast %cst_30 : f32 to vector<20x128xf32>
    %59 = arith.subf %58, %57 : vector<20x128xf32>
    %60 = math.exp %59 : vector<20x128xf32>
    %cst_31 = arith.constant 1.000000e+00 : f32
    %61 = vector.broadcast %cst_31 : f32 to vector<20x128xf32>
    %62 = arith.addf %61, %60 : vector<20x128xf32>
    %63 = tpu.reciprocal %62 {approx = true} : vector<20x128xf32> -> vector<20x128xf32>
    %64 = arith.mulf %57, %63 : vector<20x128xf32>
    %c0_32 = arith.constant 0 : index
    %c0_33 = arith.constant 0 : index
    %65 = vector.load %arg8[%c0_32, %c0_33] : memref<2x20xbf16, #tpu.memory_space<vmem>>, vector<2x20xbf16>
    %66 = arith.truncf %64 : vector<20x128xf32> to vector<20x128xbf16>
    %cst_34 = arith.constant dense<0.000000e+00> : vector<2x128xf32>
    %67 = tpu.matmul %65, %66, %cst_34 {dimension_numbers = #tpu.dot_dimension_numbers<[1], [0], [0], [1], [0, 0, 1, 1], [], []>} : vector<2x20xbf16>, vector<20x128xbf16>, vector<2x128xf32> -> vector<2x128xf32>
    %c0_35 = arith.constant 0 : index
    %c0_36 = arith.constant 0 : index
    %68 = vector.load %arg9[%c0_35, %c0_36] : memref<2x1xf32, #tpu.memory_space<vmem>>, vector<2x1xf32>
    %69 = vector.broadcast %68 : vector<2x1xf32> to vector<2x128xf32>
    %70 = arith.addf %67, %69 : vector<2x128xf32>
    %c7 = arith.constant 7 : index
    %c0_37 = arith.constant 0 : index
    %71 = vector.load %arg1[%c7, %c0_37] : memref<9x128xf32, #tpu.memory_space<vmem>>, vector<2x128xf32>
    %c5 = arith.constant 5 : index
    %c0_38 = arith.constant 0 : index
    %72 = vector.load %arg1[%c5, %c0_38] : memref<9x128xf32, #tpu.memory_space<vmem>>, vector<2x128xf32>
    %73 = arith.subf %71, %72 : vector<2x128xf32>
    %c0_39 = arith.constant 0 : index
    %c0_40 = arith.constant 0 : index
    %74 = vector.load %arg10[%c0_39, %c0_40] : memref<4x128xf32, #tpu.memory_space<vmem>>, vector<2x128xf32>
    tpu.vector_store %arg10[%c0_39, %c0_40], %70 {strides = array<i32>} : memref<4x128xf32, #tpu.memory_space<vmem>>, vector<2x128xf32>,
    %c2_41 = arith.constant 2 : index
    %c0_42 = arith.constant 0 : index
    %75 = vector.load %arg10[%c2_41, %c0_42] : memref<4x128xf32, #tpu.memory_space<vmem>>, vector<2x128xf32>
    tpu.vector_store %arg10[%c2_41, %c0_42], %73 {strides = array<i32>} : memref<4x128xf32, #tpu.memory_space<vmem>>, vector<2x128xf32>,
    return
  }
  func.func @transform_0(%arg0: i32) -> (i32, i32) {
    %c0_i32 = arith.constant 0 : i32
    %c0_i32_0 = arith.constant 0 : i32
    return %c0_i32, %arg0 : i32, i32
  }
  func.func @transform_1(%arg0: i32) -> (i32, i32) {
    %c0_i32 = arith.constant 0 : i32
    %c0_i32_0 = arith.constant 0 : i32
    %c0_i32_1 = arith.constant 0 : i32
    return %c0_i32, %c0_i32_0 : i32, i32
  }
  func.func @transform_2(%arg0: i32) -> (i32, i32) {
    %c0_i32 = arith.constant 0 : i32
    %c0_i32_0 = arith.constant 0 : i32
    %c0_i32_1 = arith.constant 0 : i32
    return %c0_i32, %c0_i32_0 : i32, i32
  }
  func.func @transform_3(%arg0: i32) -> (i32, i32) {
    %c0_i32 = arith.constant 0 : i32
    %c0_i32_0 = arith.constant 0 : i32
    %c0_i32_1 = arith.constant 0 : i32
    return %c0_i32, %c0_i32_0 : i32, i32
  }
  func.func @transform_4(%arg0: i32) -> (i32, i32) {
    %c0_i32 = arith.constant 0 : i32
    %c0_i32_0 = arith.constant 0 : i32
    %c0_i32_1 = arith.constant 0 : i32
    return %c0_i32, %c0_i32_0 : i32, i32
  }
  func.func @transform_5(%arg0: i32) -> (i32, i32) {
    %c0_i32 = arith.constant 0 : i32
    %c0_i32_0 = arith.constant 0 : i32
    %c0_i32_1 = arith.constant 0 : i32
    return %c0_i32, %c0_i32_0 : i32, i32
  }
  func.func @transform_6(%arg0: i32) -> (i32, i32) {
    %c0_i32 = arith.constant 0 : i32
    %c0_i32_0 = arith.constant 0 : i32
    %c0_i32_1 = arith.constant 0 : i32
    return %c0_i32, %c0_i32_0 : i32, i32
  }
  func.func @transform_7(%arg0: i32) -> (i32, i32) {
    %c0_i32 = arith.constant 0 : i32
    %c0_i32_0 = arith.constant 0 : i32
    %c0_i32_1 = arith.constant 0 : i32
    return %c0_i32, %c0_i32_0 : i32, i32
  }
  func.func @transform_8(%arg0: i32) -> (i32, i32) {
    %c0_i32 = arith.constant 0 : i32
    %c0_i32_0 = arith.constant 0 : i32
    %c0_i32_1 = arith.constant 0 : i32
    return %c0_i32, %c0_i32_0 : i32, i32
  }
  func.func @transform_9(%arg0: i32) -> (i32, i32) {
    %c0_i32 = arith.constant 0 : i32
    %c0_i32_0 = arith.constant 0 : i32
    return %c0_i32, %arg0 : i32, i32
  }
}

</mosaic_0001>

<bundles_post_ra>
// kernel: flow_mlp_forward.1
= control target key start
LH: loop header
LB: loop body
LE: loop exit
PB: predicated region body
PF: predicated region fallthrough
CT: control target
= control target key end

     0   :  { %s1581_s30 = smov 0   ;;  %s1583_s10 = smov 0   ;;  %s1995_s0 = inlined_call_operand.vmem [shape: f32[9,256], index: 0, kind: input, shape index: {}]   ;;  %s1996_s1 = inlined_call_operand.vmem [shape: f32[20,5], index: 1, kind: input, shape index: {}]   ;;  %s1997_s2 = inlined_call_operand.vmem [shape: f32[20,1], index: 2, kind: input, shape index: {}]   ;;  %s1998_s3 = inlined_call_operand.vmem [shape: bf16[200,20], index: 3, kind: input, shape index: {}]   ;;  %s1999_s4 = inlined_call_operand.vmem [shape: f32[200,1], index: 4, kind: input, shape index: {}]   ;;  %s2000_s5 = inlined_call_operand.vmem [shape: bf16[20,200], index: 5, kind: input, shape index: {}]   ;;  %s2001_s6 = inlined_call_operand.vmem [shape: f32[20,1], index: 6, kind: input, shape index: {}]   ;;  %s2002_s7 = inlined_call_operand.vmem [shape: bf16[2,20], index: 7, kind: input, shape index: {}]   ;;  %s2003_s8 = inlined_call_operand.vmem [shape: f32[2,1], index: 8, kind: input, shape index: {}]   ;;  %s2004_s9 = inlined_call_operand.vmem [shape: f32[4,256], index: 9, kind: output, shape index: {}]  }
   0x1   :  { %s1585_s11 = smov 0  }
   0x2 LB: > { %s1226_s12 = sadd.s32 4294967295, %s1524_s11   ;;  %s1598_s13 = sadd.s32 1, %s1524_s11   ;;  %s1524_s11 = sphi %s1585_s11, %s2007_s11   ;;  %s1520_s10 = sphi %s1583_s10, %s2006_s10   ;;  %s1516_s30 = sphi %s1581_s30, %s2005_s30  }
   0x3   : > { %s23_s14 = ssub.s32 %s1524_s11, %s1598_s13  ;;  %s26_s15 = sadd.s32 1, %s1520_s10 }
   0x4   : > { %p24_p0 = scmp.eq.s32.totalorder %s23_s14, 0  ;;  %p33_p1 = scmp.ne.s32.totalorder %s1520_s10, %s1516_s30 }
   0x5   : > { %p34_p2 = scmp.eq.s32.totalorder %s1524_s11, 0  ;;  %p1229_p4 = scmp.ge.s32.totalorder %s1524_s11, 2 }
   0x6   : > { %s1607_s16 = scalar_select %p24_p0, %s1520_s10, %s26_s15  }
   0x7   : > { %p35_p3 = por %p34_p2, %p33_p1  ;;  %277 = sbr.rel (%p1229_p4) target bundleno = 18 (0x12), region = 48 }
   0xc   : > { %280 = sbr.rel (!%p35_p3) target bundleno = 18 (0x12), region = 52  ;;  %s282_s17 = sand.u32 (%p35_p3), 1, %s1520_s10  }
   0xd   : > { %s1231_s18 = sshll.u32 (%p35_p3), %s1524_s11, 3  ;;  %s1230_s19 = sshll.u32 (%p35_p3), %s282_s17, 4 }
   0xe   : > { %s286_s22 = scalar_lea.vmem (%p35_p3), %s1995_s0, %s1231_s18  ;;  %s284_s23 = scalar_lea.vmem (%p35_p3), [#allocation2], %s1230_s19 }
   0xf   : > { %v317_v0 = vld [vmem:[%s286_s22] sm:$0xff] (%p35_p3)  ;;  %v319_v1 = vld [vmem:[%s286_s22 + $0x10] sm:$0xff] (%p35_p3) }
  0x10   : > { %318 = vst [vmem:[%s284_s23] sm:$0xff] (%p35_p3), %v317_v0 }
  0x11   : > { %320 = vst [vmem:[%s284_s23 + $0x8] sm:$0xff] %v319_v1 }
  0x12 PF: > { %p1232_p5 = scmp.ge.s32.totalorder %s1524_s11, 1  ;;  %p325_p6 = scmp.lt.s32.totalorder %s1524_s11, 3 }
  0x14   : > { %p326_p7 = pnand %p1232_p5, %p325_p6 }
  0x15   : > { %s332_s28 = sand.u32 (!%p326_p7), 1, %s1516_s30   ;;  %p366_p8 = scmp.lt.s32.totalorder (!%p326_p7), %s1226_s12, 1 }
  0x16   : > { %329 = sbr.rel (%p326_p7) target bundleno = 811 (0x32b), region = 90  ;;  %s1233_s29 = sshll.u32 (!%p326_p7), %s332_s28, 4 }
  0x17   : > { %s1624_s14 = scalar_lea.vmem (!%p326_p7), [#allocation2], %s1233_s29 }
  0x1b   : > { %v376_v2 = vld [vmem:[%s1996_s1 + $0x10] sm:$0xf]  ;;  %v374_v3 = vld [vmem:[%s1996_s1] sm:$0xff]  ;;  %v1526_v4 = vmov 1   ;;  %v1527_v5 = vmov 0   ;;  %v375_v6 = vld [vmem:[%s1996_s1 + $0x8] sm:$0xff] }
  0x1c   : > { %1357 = vset.pattern.permute.xlu1 %v1526_v4  ;;  %1359 = vset.pattern.permute.xlu2 %v1527_v5  ;;  %v373_v7 = vld [vmem:[%s1997_s2 + $0x10] sm:$0xf]  ;;  %v1528_v8 = vmov 2   ;;  %v372_v9 = vld [vmem:[%s1997_s2 + $0x8] sm:$0xff]  ;;  %v371_v10 = vld [vmem:[%s1997_s2] sm:$0xff]  ;;  %v1529_v11 = vmov 3  }
  0x1d   : > { %1356 = vset.pattern.permute.xlu0 %v1527_v5  ;;  %425 = vperm.xlu1 %1357, %v376_v2   ;;  %v1530_v12 = vmov 4   ;;  %v1373_v18 = vld [vmem:[%s1624_s14] ss:$0 sm:$0xff]  ;;  %v1374_v21 = vld [vmem:[%s1624_s14 + $0x1] ss:$0 sm:$0xff]  ;;  %v555_v22 = vld [vmem:[%s1999_s4 + $0x78] sm:$0xff] }
  0x1e   : > { %390 = vperm.xlu0 %1356, %v376_v2   ;;  %380 = vperm.xlu2 %1359, %v374_v3   ;;  %v1375_v24 = vld [vmem:[%s1624_s14 + $0x2] ss:$0 sm:$0xff]  ;;  %v1376_v29 = vld [vmem:[%s1624_s14 + $0x3] ss:$0 sm:$0xff]  ;;  %v1646_v33 = vld [vmem:[%s1624_s14 + $0x4] ss:$0 sm:$0xff] }
  0x1f   : > { %v551_v35 = vld [vmem:[%s1999_s4 + $0x58] sm:$0xff]  ;;  %v554_v36 = vld [vmem:[%s1999_s4 + $0x70] sm:$0xff]  ;;  %v553_v46 = vld [vmem:[%s1999_s4 + $0x68] sm:$0xff]  ;;  %vm793_vm0 = vcmask 1041408   ;;  %vm753_vm1 = vcmask 162816   ;;  %vm1076_vm2 = vcmask 1043456  }
  0x20   : > { %v562_v45 = vld [vmem:[%s1999_s4 + $0xb0] sm:$0xff]  ;;  %v552_v47 = vld [vmem:[%s1999_s4 + $0x60] sm:$0xff]  ;;  %v547_v54 = vld [vmem:[%s1999_s4 + $0x38] sm:$0xff]  ;;  %vm1069_vm3 = vcmask 588800   ;;  %s2009_s12 = smov (!%p366_p8, %s1226_s12), 1 }
  0x21   : > { %v550_v55 = vld [vmem:[%s1999_s4 + $0x50] sm:$0xff]  ;;  %v564_v56 = vld [vmem:[%s1999_s4 + $0xc0] sm:$0xff]  ;;  %s1234_s29 = sshll.u32 %s2009_s12, 2 }
  0x22   : > { %s369_s18 = scalar_lea.vmem %s2004_s9, %s1234_s29 }
  0x25   : > { %1358 = vset.pattern.permute.xlu1 %v1528_v8 }
  0x26   : > { %385 = vperm.xlu2 %1359, %v375_v6   ;;  %409 = vperm.xlu0 %1356, %v373_v7  }
  0x27   : > { %445 = vperm.xlu1 %1358, %v376_v2  }
  0x2e   : > { %1360 = vset.pattern.permute.xlu0 %v1529_v11  ;;  %404 = vperm.xlu2 %1359, %v372_v9  }
  0x2f   : > { %1361 = vset.pattern.permute.xlu1 %v1527_v5  ;;  %465 = vperm.xlu0 %1360, %v376_v2  }
  0x30   : > { %399 = vperm.xlu1 %1361, %v371_v10  }
  0x36   : > { %1363 = vset.pattern.permute.xlu2 %v1526_v4 }
  0x37   : > { %1364 = vset.pattern.permute.xlu0 %v1530_v12  ;;  %421 = vperm.xlu2 %1363, %v375_v6  }
  0x38   : > { %485 = vperm.xlu0 %1364, %v376_v2   ;;  %1362 = vset.pattern.permute.xlu1 %v1526_v4  ;;  %v544_v4 = vld [vmem:[%s1999_s4 + $0x20] sm:$0xff] }
  0x39   : > { %417 = vperm.xlu1 %1362, %v374_v3  }
  0x3f   : > { %1366 = vset.pattern.permute.xlu2 %v1528_v8 }
  0x40   : > { %441 = vperm.xlu2 %1366, %v375_v6   ;;  %477 = vperm.xlu0 %1364, %v374_v3  }
  0x41   : > { %1365 = vset.pattern.permute.xlu1 %v1528_v8  ;;  %v548_v8 = vld [vmem:[%s1999_s4 + $0x40] sm:$0xff] }
  0x42   : > { %437 = vperm.xlu1 %1365, %v374_v3  }
  0x48   : > { %1368 = vset.pattern.permute.xlu2 %v1529_v11  ;;  %1371 = vset.pattern.permute.xlu0 %v1527_v5 }
  0x49   : > { %461 = vperm.xlu2 %1368, %v375_v6   ;;  %642 = vperm.xlu0 %1371, %v555_v22  }
  0x4a   : > { %1367 = vset.pattern.permute.xlu1 %v1529_v11 }
  0x4b   : > { %457 = vperm.xlu1 %1367, %v374_v3  }
  0x51   : > { %1370 = vset.pattern.permute.xlu2 %v1527_v5  ;;  %622 = vperm.xlu0 %1371, %v551_v35  }
  0x52   : > { %637 = vperm.xlu2 %1370, %v554_v36   ;;  %v541_v36 = vld [vmem:[%s1999_s4 + $0x8] sm:$0xff] }
  0x53   : > { %1369 = vset.pattern.permute.xlu1 %v1530_v12 }
  0x54   : > { %481 = vperm.xlu1 %1369, %v375_v6  }
  0x59   : > { %677 = vperm.xlu0 %1371, %v562_v45   ;;  %v542_v45 = vld [vmem:[%s1999_s4 + $0x10] sm:$0xff] }
  0x5a   : > { %632 = vperm.xlu2 %1370, %v553_v46   ;;  %v1309_v46 = vld [vmem:[%s1998_s3] sm:$0xff] }
  0x5c   : > { %1372 = vset.pattern.permute.xlu1 %v1527_v5  ;;  %v549_v5 = vld [vmem:[%s1999_s4 + $0x48] sm:$0xff] }
  0x5d   : > { %627 = vperm.xlu1 %1372, %v552_v47   ;;  %v1315_v47 = vld [vmem:[%s1998_s3 + $0x30] sm:$0xff] }
  0x61   : > { %602 = vperm.xlu0 %1371, %v547_v54   ;;  %v1038_v54 = vld [vmem:[%s2001_s6 + $0x10] sm:$0xf] }
  0x62   : > { %617 = vperm.xlu2 %1370, %v550_v55   ;;  %v1037_v55 = vld [vmem:[%s2001_s6 + $0x8] sm:$0xff] }
  0x65   : > { %687 = vperm.xlu1 %1372, %v564_v56   ;;  %v1137_v56 = vld [vmem:[%s2003_s8] sm:$0x3] }
  0x69   : > { %587 = vperm.xlu0 %1371, %v544_v4  }
  0x6a   : > { %612 = vperm.xlu2 %1370, %v549_v5  }
  0x6d   : > { %607 = vperm.xlu1 %1372, %v548_v8   ;;  %v1314_v8 = vld [vmem:[%s1998_s3 + $0x28] sm:$0xff] }
  0x78   : > { %v381_v13 = vpop.permute.xlu2 %380 }
  0x79   : > { %v394_v50 = vmul.f32 %v1373_v18, %v381_v13 }
  0x80   : > { %v386_v16 = vpop.permute.xlu2 %385 }
  0x81   : > { %v395_v53 = vmul.f32 %v1373_v18, %v386_v16 }
  0x88   : > { %v405_v26 = vpop.permute.xlu2 %404 }
  0x89   : > { %v413_v62 = vadd.f32 %v405_v26, %v395_v53  ;;  %v1319_v53 = vld [vmem:[%s1998_s3 + $0x50] sm:$0xff] }
  0x8f   : > { %v426_v14 = vpop.permute.xlu1 %425 }
  0x90   : > { %v391_v15 = vpop.permute.xlu0 %390  ;;  %v431_v28 = vmul.f32 %v1374_v21, %v426_v14 }
  0x91   : > { %v396_v20 = vmul.f32 %v1373_v18, %v391_v15  ;;  %v422_v41 = vpop.permute.xlu2 %421 }
  0x92   : > { %v430_v63 = vmul.f32 %v1374_v21, %v422_v41 }
  0x94   : > { %v433_v9 = vadd.f32 %v430_v63, %v413_v62 }
  0x98   : > { %v410_v17 = vpop.permute.xlu0 %409 }
  0x99   : > { %v446_v19 = vpop.permute.xlu1 %445  ;;  %v414_v23 = vadd.f32 %v410_v17, %v396_v20 }
  0x9a   : > { %v451_v31 = vmul.f32 %v1375_v24, %v446_v19  ;;  %v442_v49 = vpop.permute.xlu2 %441 }
  0x9b   : > { %v434_v30 = vadd.f32 %v431_v28, %v414_v23  ;;  %v450_v10 = vmul.f32 %v1375_v24, %v442_v49  ;;  %v559_v23 = vld [vmem:[%s1999_s4 + $0x98] sm:$0xff]  ;;  %v540_v49 = vld [vmem:[%s1999_s4] sm:$0xff] }
  0x9c   : > { %662 = vperm.xlu0 %1371, %v559_v23  }
  0x9d   : > { %v454_v34 = vadd.f32 %v451_v31, %v434_v30  ;;  %v453_v16 = vadd.f32 %v450_v10, %v433_v9  ;;  %v556_v30 = vld [vmem:[%s1999_s4 + $0x80] sm:$0xff]  ;;  %v561_v31 = vld [vmem:[%s1999_s4 + $0xa8] sm:$0xff] }
  0xa1   : > { %v466_v25 = vpop.permute.xlu0 %465 }
  0xa2   : > { %v400_v27 = vpop.permute.xlu1 %399  ;;  %v471_v32 = vmul.f32 %v1376_v29, %v466_v25  ;;  %v563_v25 = vld [vmem:[%s1999_s4 + $0xb8] sm:$0xff] }
  0xa3   : > { %v412_v57 = vadd.f32 %v400_v27, %v394_v50  ;;  %v462_v6 = vpop.permute.xlu2 %461  ;;  %682 = vperm.xlu1 %1372, %v563_v25   ;;  %v557_v50 = vld [vmem:[%s1999_s4 + $0x88] sm:$0xff] }
  0xa4   : > { %v474_v38 = vadd.f32 %v471_v32, %v454_v34  ;;  %v470_v13 = vmul.f32 %v1376_v29, %v462_v6  ;;  %v560_v32 = vld [vmem:[%s1999_s4 + $0xa0] sm:$0xff]  ;;  %647 = vperm.xlu0 %1371, %v556_v30  }
  0xa6   : > { %v473_v20 = vadd.f32 %v470_v13, %v453_v16 }
  0xaa   : > { %v486_v37 = vpop.permute.xlu0 %485 }
  0xab   : > { %v491_v39 = vmul.f32 %v1646_v33, %v486_v37  ;;  %v418_v40 = vpop.permute.xlu1 %417  ;;  %667 = vperm.xlu1 %1372, %v560_v32   ;;  %v558_v37 = vld [vmem:[%s1999_s4 + $0x90] sm:$0xff] }
  0xac   : > { %v429_v51 = vmul.f32 %v1374_v21, %v418_v40  ;;  %572 = vperm.xlu0 %1371, %v541_v36   ;;  %v638_v63 = vpop.permute.xlu2 %637 }
  0xad   : > { %v494_v42 = vadd.f32 %v491_v39, %v474_v38  ;;  %v545_v38 = vld [vmem:[%s1999_s4 + $0x28] sm:$0xff] }
  0xae   : > { %v432_v61 = vadd.f32 %v429_v51, %v412_v57  ;;  %v1310_v51 = vld [vmem:[%s1998_s3 + $0x8] sm:$0xff]  ;;  %v1311_v57 = vld [vmem:[%s1998_s3 + $0x10] sm:$0xff] }
  0xaf   : > { %v497_v43 = vsub.f32 0.0, %v494_v42 }
  0xb1   : > { %v502_v44 = vmul.f32 1.442695, %v497_v43  ;;  %v543_v43 = vld [vmem:[%s1999_s4 + $0x18] sm:$0xff] }
  0xb2   : > { %v478_v60 = vpop.permute.xlu0 %477 }
  0xb3   : > { %1378 = vpow2.f32 %v502_v44  ;;  %v489_v3 = vmul.f32 %v1646_v33, %v478_v60  ;;  %592 = vperm.xlu1 %1372, %v545_v38   ;;  %v1036_v60 = vld [vmem:[%s2001_s6] sm:$0xff] }
  0xb4   : > { %v438_v48 = vpop.permute.xlu1 %437  ;;  %1046 = vperm.xlu0 %1371, %v1037_v55  }
  0xb5   : > { %v449_v59 = vmul.f32 %v1375_v24, %v438_v48  ;;  %v546_v24 = vld [vmem:[%s1999_s4 + $0x30] sm:$0xff]  ;;  %v1318_v48 = vld [vmem:[%s1998_s3 + $0x48] sm:$0xff] }
  0xb6   : > { %597 = vperm.xlu2 %1370, %v546_v24  }
  0xb7   : > { %v452_v1 = vadd.f32 %v449_v59, %v432_v61  ;;  %v1320_v59 = vld [vmem:[%s1998_s3 + $0x58] sm:$0xff]  ;;  %v537_v61 = vld [vmem:[%s1998_s3 + $0x60] sm:$0xf] }
  0xb8   : > { %v739_v62 = vunpack.c.l.b16 %v537_v61 }
  0xb9   : > { %v1379_v52 = vpop.eup %1378 }
  0xba   : > { %v506_v58 = vadd.f32 1.0, %v1379_v52  ;;  %v1316_v52 = vld [vmem:[%s1998_s3 + $0x38] sm:$0xff] }
  0xbb   : > { %577 = vperm.xlu1 %1372, %v542_v45   ;;  %v1783_v4 = vpop.permute.xlu0 %642 }
  0xbc   : > { %1380 = vrcp.f32 %v506_v58  ;;  %v1317_v58 = vld [vmem:[%s1998_s3 + $0x40] sm:$0xff] }
  0xbd   : > { %v458_v0 = vpop.permute.xlu1 %457 }
  0xbe   : > { %v469_v2 = vmul.f32 %v1376_v29, %v458_v0  ;;  %672 = vperm.xlu2 %1370, %v561_v31   ;;  %v1312_v0 = vld [vmem:[%s1998_s3 + $0x18] sm:$0xff] }
  0xc0   : > { %v472_v7 = vadd.f32 %v469_v2, %v452_v1  ;;  %v752_v1 = vpack.c.b16 %v739_v62, %v739_v62  ;;  %v633_v2 = vpop.permute.xlu2 %632 }
  0xc2   : > { %v1381_v11 = vpop.eup %1380  ;;  %v492_v12 = vadd.f32 %v489_v3, %v472_v7  ;;  %v1313_v3 = vld [vmem:[%s1998_s3 + $0x20] sm:$0xff] }
  0xc3   : > { %v512_v14 = vmul.f32 %v1381_v11, %v494_v42  ;;  %652 = vperm.xlu1 %1372, %v557_v50   ;;  %v1788_v6 = vpop.permute.xlu0 %622 }
  0xc4   : > { %v495_v15 = vsub.f32 0.0, %v492_v12 }
  0xc5   : > { %v539_v17 = vpack.c.bf16 %v512_v14, %v512_v14 }
  0xc6   : > { %v498_v18 = vmul.f32 1.442695, %v495_v15  ;;  %v482_v19 = vpop.permute.xlu1 %481  ;;  %657 = vperm.xlu2 %1370, %v558_v37  }
  0xc7   : > { %v490_v21 = vmul.f32 %v1646_v33, %v482_v19  ;;  %v795_v22 = vsel %vm793_vm0, %v539_v17, 0 }
  0xc8   : > { %803 = vmatpush.bf16.msra.mxu0 %v795_v22  ;;  %1323 = vmatpush.bf16.msra.mxu2 %v795_v22  ;;  %1382 = vpow2.f32 %v498_v18  ;;  %v1785_v5 = vpop.permute.xlu2 %617 }
  0xc9   : > { %v493_v26 = vadd.f32 %v490_v21, %v473_v20  ;;  %1324 = vmatpush.bf16.msra.mxu3 %v795_v22 }
  0xcb   : > { %v496_v27 = vsub.f32 0.0, %v493_v26  ;;  %1051 = vperm.xlu1 %1372, %v1038_v54   ;;  %v1796_v10 = vpop.permute.xlu0 %677 }
  0xcd   : > { %v500_v28 = vmul.f32 1.442695, %v496_v27 }
  0xce   : > { %v1383_v29 = vpop.eup %1382  ;;  %582 = vperm.xlu2 %1370, %v543_v43  }
  0xcf   : > { %1384 = vpow2.f32 %v500_v28  ;;  %v504_v33 = vadd.f32 1.0, %v1383_v29  ;;  %v628_v9 = vpop.permute.xlu1 %627 }
  0xd0   : > { %v1790_v7 = vpop.permute.xlu2 %612 }
  0xd1   : > { %1386 = vrcp.f32 %v504_v33 }
  0xd3   : > { %1140 = vperm.xlu1 %1372, %v1137_v56   ;;  %v1802_v13 = vpop.permute.xlu0 %602 }
  0xd5   : > { %v1385_v34 = vpop.eup %1384 }
  0xd6   : > { %v505_v35 = vadd.f32 1.0, %v1385_v34  ;;  %567 = vperm.xlu2 %1370, %v540_v49  }
  0xd7   : > { %v1387_v39 = vpop.eup %1386 }
  0xd8   : > { %1388 = vrcp.f32 %v505_v35  ;;  %v510_v41 = vmul.f32 %v1387_v39, %v492_v12  ;;  %v1800_v12 = vpop.permute.xlu1 %687 }
  0xdb   : > { %v1808_v16 = vpop.permute.xlu0 %587 }
  0xde   : > { %v1389_v40 = vpop.eup %1388  ;;  %1041 = vperm.xlu2 %1370, %v1036_v60  }
  0xdf   : > { %v511_v42 = vmul.f32 %v1389_v40, %v493_v26 }
  0xe0   : > { %v1806_v15 = vpop.permute.xlu1 %607 }
  0xe1   : > { %v538_v44 = vpack.c.bf16 %v511_v42, %v510_v41 }
  0xe3   : > { %804 = vmatpush.bf16.msra.mxu0 %v538_v44  ;;  %1325 = vmatpush.bf16.msra.mxu2 %v538_v44 }
  0xe4   : > { %1326 = vmatpush.bf16.msra.mxu3 %v538_v44 }
  0xe6   : > { %1283 = vmatmul.msk.bf16.vlgmr.msra.gmra.mxu0 %vm753_vm1, %v1309_v46  ;;  %1289 = vmatmul.msk.bf16.vlgmr.msra.gmra.mxu2 %vm753_vm1, %v1315_v47 }
  0xe7   : > { %1292 = vmatmul.msk.bf16.vlgmr.msra.gmra.mxu3 %vm753_vm1, %v1318_v48 }
  0xf6   : > { %1284 = vmatmul.msk.bf16.gmra.mxu0 %vm753_vm1, %v1310_v51  ;;  %1290 = vmatmul.msk.bf16.gmra.mxu2 %vm753_vm1, %v1316_v52 }
  0xf7   : > { %1293 = vmatmul.msk.bf16.gmra.mxu3 %vm753_vm1, %v1319_v53 }
 0x106   : > { %1285 = vmatmul.msk.bf16.gmra.mxu0 %vm753_vm1, %v1311_v57  ;;  %1291 = vmatmul.msk.bf16.gmra.mxu2 %vm753_vm1, %v1317_v58 }
 0x107   : > { %1294 = vmatmul.msk.bf16.gmra.mxu3 %vm753_vm1, %v1320_v59 }
 0x10e   : > { %v1814_v19 = vpop.permute.xlu0 %662 }
 0x110   : > { %v1798_v11 = vpop.permute.xlu2 %597 }
 0x115   : > { %v1812_v18 = vpop.permute.xlu1 %682 }
 0x116   : > { %1286 = vmatmul.msk.bf16.gmra.mxu0 %vm753_vm1, %v1312_v0  ;;  %v1818_v22 = vpop.permute.xlu0 %647 }
 0x117   : > { %1295 = vmatmul.msk.bf16.gmra.mxu3 %vm753_vm1, %v752_v1 }
 0x118   : > { %v1804_v14 = vpop.permute.xlu2 %672 }
 0x11d   : > { %v1816_v21 = vpop.permute.xlu1 %667 }
 0x11e   : > { %v573_v30 = vpop.permute.xlu0 %572 }
 0x120   : > { %v1810_v17 = vpop.permute.xlu2 %657 }
 0x125   : > { %v1820_v27 = vpop.permute.xlu1 %592 }
 0x126   : > { %1287 = vmatmul.msk.bf16.gmra.mxu0 %vm753_vm1, %v1313_v3 }
 0x128   : > { %v583_v20 = vpop.permute.xlu2 %582 }
 0x12d   : > { %v578_v37 = vpop.permute.xlu1 %577 }
 0x130   : > { %v568_v23 = vpop.permute.xlu2 %567 }
 0x136   : > { %1288 = vmatmul.msk.bf16.gmra.mxu0 %vm753_vm1, %v1314_v8 }
 0x163   : > { %v806_v24 = vpop.f32.mrf.mxu0 }
 0x164   : > { %v807_v25 = vadd.f32 %v806_v24, %v568_v23 }
 0x166   : > { %v870_v26 = vsub.f32 0.0, %v807_v25 }
 0x168   : > { %v895_v28 = vmul.f32 1.442695, %v870_v26 }
 0x169   : > { %v836_v29 = vpop.f32.mrf.mxu2 }
 0x16a   : > { %v1822_v31 = vpop.f32.mrf.mxu3  ;;  %1390 = vpow2.f32 %v895_v28  ;;  %v1826_v41 = vadd.f32 %v836_v29, %v628_v9 }
 0x16b   : > { %v808_v32 = vpop.f32.mrf.mxu0 }
 0x16c   : > { %v809_v33 = vadd.f32 %v808_v32, %v573_v30  ;;  %v882_v47 = vsub.f32 0.0, %v1826_v41 }
 0x16e   : > { %v871_v34 = vsub.f32 0.0, %v809_v33  ;;  %v919_v55 = vmul.f32 1.442695, %v882_v47 }
 0x170   : > { %v897_v35 = vmul.f32 1.442695, %v871_v34  ;;  %v1391_v38 = vpop.eup %1390 }
 0x171   : > { %v838_v36 = vpop.f32.mrf.mxu2  ;;  %v945_v43 = vadd.f32 1.0, %v1391_v38 }
 0x172   : > { %1392 = vpow2.f32 %v897_v35  ;;  %v1824_v39 = vpop.f32.mrf.mxu3  ;;  %v1830_v44 = vadd.f32 %v838_v36, %v633_v2 }
 0x173   : > { %v811_v40 = vpop.f32.mrf.mxu0  ;;  %1394 = vrcp.f32 %v945_v43 }
 0x174   : > { %v1828_v42 = vadd.f32 %v811_v40, %v578_v37  ;;  %v883_v49 = vsub.f32 0.0, %v1830_v44 }
 0x176   : > { %v872_v45 = vsub.f32 0.0, %v1828_v42  ;;  %v921_v58 = vmul.f32 1.442695, %v883_v49 }
 0x178   : > { %v1393_v46 = vpop.eup %1392  ;;  %v899_v50 = vmul.f32 1.442695, %v872_v45 }
 0x179   : > { %v946_v48 = vadd.f32 1.0, %v1393_v46  ;;  %v841_v51 = vpop.f32.mrf.mxu2  ;;  %v1395_v61 = vpop.eup %1394 }
 0x17a   : > { %v1835_v52 = vadd.f32 %v841_v51, %v638_v63  ;;  %v1837_v53 = vpop.f32.mrf.mxu3  ;;  %v1840_v63 = vmul.f32 %v1395_v61, %v807_v25 }
 0x17b   : > { %1396 = vrcp.f32 %v946_v48  ;;  %v813_v54 = vpop.f32.mrf.mxu0 }
 0x17c   : > { %v884_v56 = vsub.f32 0.0, %v1835_v52  ;;  %v814_v57 = vadd.f32 %v813_v54, %v583_v20  ;;  %1398 = vpow2.f32 %v899_v50 }
 0x17d   : > { %1400 = vpow2.f32 %v919_v55 }
 0x17e   : > { %v923_v59 = vmul.f32 1.442695, %v884_v56  ;;  %v873_v60 = vsub.f32 0.0, %v814_v57  ;;  %1402 = vpow2.f32 %v921_v58 }
 0x180   : > { %v901_v62 = vmul.f32 1.442695, %v873_v60  ;;  %1404 = vpow2.f32 %v923_v59 }
 0x181   : > { %v1397_v0 = vpop.eup %1396  ;;  %v843_v1 = vpop.f32.mrf.mxu2 }
 0x182   : > { %v1842_v2 = vmul.f32 %v1397_v0, %v809_v33  ;;  %v844_v3 = vadd.f32 %v843_v1, %v1783_v4  ;;  %v858_v8 = vpop.f32.mrf.mxu3  ;;  %v1399_v9 = vpop.eup %1398  ;;  %1406 = vpow2.f32 %v901_v62 }
 0x183   : > { %v1845_v20 = vpop.f32.mrf.mxu0  ;;  %v1401_v26 = vpop.eup %1400  ;;  %v947_v28 = vadd.f32 1.0, %v1399_v9 }
 0x184   : > { %v885_v23 = vsub.f32 0.0, %v844_v3  ;;  %v1023_v24 = vpack.c.bf16 %v1842_v2, %v1840_v63  ;;  %v1403_v30 = vpop.eup %1402  ;;  %v957_v33 = vadd.f32 1.0, %v1401_v26 }
 0x185   : > { %v958_v37 = vadd.f32 1.0, %v1403_v30 }
 0x186   : > { %v925_v29 = vmul.f32 1.442695, %v885_v23  ;;  %v1405_v25 = vpop.eup %1404 }
 0x187   : > { %v959_v35 = vadd.f32 1.0, %v1405_v25 }
 0x188   : > { %1408 = vpow2.f32 %v925_v29  ;;  %v1407_v32 = vpop.eup %1406 }
 0x189   : > { %1410 = vrcp.f32 %v947_v28  ;;  %v948_v34 = vadd.f32 1.0, %v1407_v32  ;;  %v846_v45 = vpop.f32.mrf.mxu2 }
 0x18a   : > { %v861_v4 = vpop.f32.mrf.mxu3 }
 0x18b   : > { %v1849_v36 = vpop.f32.mrf.mxu0  ;;  %1412 = vrcp.f32 %v948_v34  ;;  %v1862_v56 = vadd.f32 %v861_v4, %v1796_v10  ;;  %v1877_v10 = vadd.f32 %v1837_v53, %v1816_v21 }
 0x18c   : > { %1414 = vrcp.f32 %v957_v33  ;;  %v1896_v33 = vadd.f32 %v846_v45, %v1818_v22 }
 0x18d   : > { %1416 = vrcp.f32 %v959_v35  ;;  %v892_v0 = vsub.f32 0.0, %v1862_v56 }
 0x18e   : > { %v1409_v38 = vpop.eup %1408  ;;  %1418 = vrcp.f32 %v958_v37 }
 0x18f   : > { %v960_v40 = vadd.f32 1.0, %v1409_v38  ;;  %v1411_v43 = vpop.eup %1410  ;;  %v939_v26 = vmul.f32 1.442695, %v892_v0 }
 0x190   : > { %v1852_v48 = vmul.f32 %v1411_v43, %v1828_v42  ;;  %v1867_v42 = vadd.f32 %v858_v8, %v1804_v14  ;;  %v1884_v8 = vadd.f32 %v1824_v39, %v1814_v19 }
 0x191   : > { %1420 = vrcp.f32 %v960_v40  ;;  %v1413_v46 = vpop.eup %1412  ;;  %v886_v40 = vsub.f32 0.0, %v1896_v33 }
 0x192   : > { %v863_v47 = vpop.f32.mrf.mxu3  ;;  %v1854_v49 = vmul.f32 %v1413_v46, %v814_v57  ;;  %v1415_v54 = vpop.eup %1414  ;;  %v889_v19 = vsub.f32 0.0, %v1884_v8 }
 0x193   : > { %v1857_v50 = vadd.f32 %v863_v47, %v1812_v18  ;;  %v1859_v51 = vpop.f32.mrf.mxu0  ;;  %v1417_v55 = vpop.eup %1416  ;;  %v1872_v18 = vadd.f32 %v1822_v31, %v1810_v17  ;;  %v1007_v1 = vmul.f32 %v1415_v54, %v1826_v41  ;;  %v891_v31 = vsub.f32 0.0, %v1867_v42 }
 0x194   : > { %v1024_v58 = vpack.c.bf16 %v1854_v49, %v1852_v48  ;;  %v1419_v59 = vpop.eup %1418  ;;  %v1009_v61 = vmul.f32 %v1417_v55, %v1835_v52  ;;  %v848_v52 = vpop.f32.mrf.mxu2  ;;  %v890_v41 = vsub.f32 0.0, %v1877_v10  ;;  %v933_v34 = vmul.f32 1.442695, %v889_v19 }
 0x195   : > { %v893_v57 = vsub.f32 0.0, %v1857_v50  ;;  %v1008_v14 = vmul.f32 %v1419_v59, %v1830_v44  ;;  %v888_v53 = vsub.f32 0.0, %v1872_v18  ;;  %v653_v44 = vpop.permute.xlu1 %652  ;;  %v937_v30 = vmul.f32 1.442695, %v891_v31 }
 0x196   : > { %v1893_v39 = vadd.f32 %v848_v52, %v653_v44  ;;  %v927_v45 = vmul.f32 1.442695, %v886_v40 }
 0x197   : > { %v1421_v60 = vpop.eup %1420  ;;  %v1029_v29 = vpack.c.bf16 %v1008_v14, %v1007_v1  ;;  %v931_v32 = vmul.f32 1.442695, %v888_v53 }
 0x198   : > { %v1010_v62 = vmul.f32 %v1421_v60, %v844_v3  ;;  %v941_v3 = vmul.f32 1.442695, %v893_v57  ;;  %v887_v4 = vsub.f32 0.0, %v1893_v39 }
 0x19a   : > { %v866_v9 = vpop.f32.mrf.mxu3  ;;  %v1030_v17 = vpack.c.bf16 %v1010_v62, %v1009_v61  ;;  %1422 = vpow2.f32 %v941_v3  ;;  %v929_v43 = vmul.f32 1.442695, %v887_v4 }
 0x19b   : > { %v867_v23 = vadd.f32 %v866_v9, %v1800_v12  ;;  %v1888_v21 = vpop.f32.mrf.mxu0  ;;  %v935_v12 = vmul.f32 1.442695, %v890_v41  ;;  %1424 = vpow2.f32 %v939_v26 }
 0x19c   : > { %1080 = vmatpush.bf16.msra.mxu1 %v1030_v17 }
 0x19d   : > { %v894_v28 = vsub.f32 0.0, %v867_v23 }
 0x19f   : > { %v943_v25 = vmul.f32 1.442695, %v894_v28 }
 0x1a0   : > { %1081 = vmatpush.bf16.msra.mxu1 %v1029_v29  ;;  %v1423_v38 = vpop.eup %1422 }
 0x1a1   : > { %1426 = vpow2.f32 %v943_v25  ;;  %v1425_v46 = vpop.eup %1424  ;;  %v968_v54 = vadd.f32 1.0, %v1423_v38 }
 0x1a2   : > { %v868_v35 = vpop.f32.mrf.mxu3  ;;  %1428 = vpow2.f32 %v937_v30  ;;  %v967_v60 = vadd.f32 1.0, %v1425_v46 }
 0x1a3   : > { %v826_v37 = vpop.f32.mrf.mxu0  ;;  %1430 = vpow2.f32 %v931_v32 }
 0x1a4   : > { %1432 = vpow2.f32 %v935_v12  ;;  %v1904_v19 = vadd.f32 %v826_v37, %v1806_v15 }
 0x1a5   : > { %1434 = vpow2.f32 %v933_v34 }
 0x1a6   : > { %1436 = vpow2.f32 %v929_v43 }
 0x1a7   : > { %v1427_v47 = vpop.eup %1426 }
 0x1a8   : > { %v1429_v22 = vpop.eup %1428  ;;  %v969_v55 = vadd.f32 1.0, %v1427_v47 }
 0x1a9   : > { %v1431_v59 = vpop.eup %1430  ;;  %v966_v0 = vadd.f32 1.0, %v1429_v22 }
 0x1aa   : > { %v1433_v57 = vpop.eup %1432  ;;  %1438 = vrcp.f32 %v969_v55  ;;  %v963_v1 = vadd.f32 1.0, %v1431_v59 }
 0x1ab   : > { %v828_v61 = vpop.f32.mrf.mxu0  ;;  %v1435_v62 = vpop.eup %1434  ;;  %1440 = vrcp.f32 %v968_v54  ;;  %v965_v14 = vadd.f32 1.0, %v1433_v57 }
 0x1ac   : > { %1442 = vpow2.f32 %v927_v45  ;;  %v964_v9 = vadd.f32 1.0, %v1435_v62  ;;  %v1437_v17 = vpop.eup %1436  ;;  %v1901_v52 = vadd.f32 %v828_v61, %v1790_v7  ;;  %v1912_v7 = vadd.f32 %v1888_v21, %v1802_v13 }
 0x1ad   : > { %1444 = vrcp.f32 %v967_v60  ;;  %v962_v28 = vadd.f32 1.0, %v1437_v17  ;;  %v878_v13 = vsub.f32 0.0, %v1904_v19 }
 0x1ae   : > { %1446 = vrcp.f32 %v966_v0  ;;  %v877_v40 = vsub.f32 0.0, %v1912_v7 }
 0x1af   : > { %1448 = vrcp.f32 %v963_v1  ;;  %v911_v22 = vmul.f32 1.442695, %v878_v13 }
 0x1b0   : > { %v1439_v31 = vpop.eup %1438  ;;  %1450 = vrcp.f32 %v965_v14  ;;  %v1321_v14 = vld [vmem:[%s2000_s5 + $0x4] sm:$0xf] }
 0x1b1   : > { %v1441_v3 = vpop.eup %1440  ;;  %v1019_v53 = vmul.f32 %v1439_v31, %v867_v23  ;;  %1452 = vrcp.f32 %v964_v9  ;;  %v879_v23 = vsub.f32 0.0, %v1901_v52  ;;  %v1300_v9 = vld [vmem:[%s2000_s5 + $0x8] sm:$0xf0] }
 0x1b2   : > { %v1443_v41 = vpop.eup %1442  ;;  %v1018_v25 = vmul.f32 %v1441_v3, %v1857_v50  ;;  %1454 = vrcp.f32 %v962_v28  ;;  %v1919_v50 = vadd.f32 %v1859_v51, %v1798_v11  ;;  %v1932_v51 = vadd.f32 %v1845_v20, %v1808_v16 }
 0x1b3   : > { %v831_v44 = vpop.f32.mrf.mxu0  ;;  %v1445_v26 = vpop.eup %1444  ;;  %v1035_v30 = vpack.c.bf16 %v1019_v53, %v1019_v53  ;;  %v961_v12 = vadd.f32 1.0, %v1443_v41  ;;  %v913_v43 = vmul.f32 1.442695, %v879_v23  ;;  %v1303_v41 = vor.u32 %v1321_v14, %v1300_v9 }
 0x1b4   : > { %v1907_v29 = vadd.f32 %v831_v44, %v1785_v5  ;;  %v1447_v32 = vpop.eup %1446  ;;  %v1017_v15 = vmul.f32 %v1445_v26, %v1862_v56  ;;  %v1926_v56 = vadd.f32 %v1849_v36, %v1820_v27  ;;  %v909_v27 = vmul.f32 1.442695, %v877_v40 }
 0x1b5   : > { %v1078_v4 = vsel %vm1076_vm2, %v1035_v30, 0  ;;  %v1449_v35 = vpop.eup %1448  ;;  %v1016_v38 = vmul.f32 %v1447_v32, %v1867_v42  ;;  %1456 = vrcp.f32 %v961_v12  ;;  %v876_v42 = vsub.f32 0.0, %v1919_v50 }
 0x1b6   : > { %v880_v34 = vsub.f32 0.0, %v1907_v29  ;;  %1101 = vmatpush.bf16.msrb.mxu2 %v1078_v4  ;;  %v1451_v5 = vpop.eup %1450  ;;  %v1034_v46 = vpack.c.bf16 %v1018_v25, %v1017_v15  ;;  %v1013_v47 = vmul.f32 %v1449_v35, %v1872_v18  ;;  %v874_v20 = vsub.f32 0.0, %v1932_v51  ;;  %v1022_v35 = vld [vmem:[%s2000_s5 + $0x10] sm:$0x33] }
 0x1b7   : > { %v1453_v37 = vpop.eup %1452  ;;  %v1015_v11 = vmul.f32 %v1451_v5, %v1877_v10  ;;  %v875_v10 = vsub.f32 0.0, %v1926_v56  ;;  %v907_v60 = vmul.f32 1.442695, %v876_v42 }
 0x1b8   : > { %v915_v21 = vmul.f32 1.442695, %v880_v34  ;;  %v1014_v55 = vmul.f32 %v1453_v37, %v1884_v8  ;;  %v1455_v18 = vpop.eup %1454  ;;  %v903_v17 = vmul.f32 1.442695, %v874_v20  ;;  %v1042_v20 = vpop.permute.xlu2 %1041 }
 0x1b9   : > { %v1033_v36 = vpack.c.bf16 %v1016_v38, %v1015_v11  ;;  %v1012_v61 = vmul.f32 %v1455_v18, %v1893_v39  ;;  %v905_v8 = vmul.f32 1.442695, %v875_v10  ;;  %v1062_v38 = vunpack.c.h.b16 %v1022_v35 }
 0x1ba   : > { %1102 = vmatpush.bf16.msrb.mxu2 %v1034_v46  ;;  %1458 = vpow2.f32 %v915_v21 }
 0x1bb   : > { %v833_v54 = vpop.f32.mrf.mxu0  ;;  %1460 = vpow2.f32 %v913_v43  ;;  %v1457_v16 = vpop.eup %1456 }
 0x1bc   : > { %v834_v45 = vadd.f32 %v833_v54, %v1788_v6  ;;  %1462 = vpow2.f32 %v911_v22  ;;  %v1032_v6 = vpack.c.bf16 %v1014_v55, %v1013_v47  ;;  %v1011_v1 = vmul.f32 %v1457_v16, %v1896_v33 }
 0x1bd   : > { %1464 = vpow2.f32 %v909_v27  ;;  %v1066_v54 = vpack.c.b16 %v1062_v38, %v1062_v38 }
 0x1be   : > { %v881_v59 = vsub.f32 0.0, %v834_v45  ;;  %1103 = vmatpush.bf16.msrb.mxu2 %v1033_v36  ;;  %v1031_v31 = vpack.c.bf16 %v1012_v61, %v1011_v1  ;;  %v1052_v1 = vpop.permute.xlu1 %1051 }
 0x1c0   : > { %v917_v57 = vmul.f32 1.442695, %v881_v59  ;;  %v1459_v62 = vpop.eup %1458 }
 0x1c1   : > { %v1461_v0 = vpop.eup %1460  ;;  %v955_v39 = vadd.f32 1.0, %v1459_v62 }
 0x1c2   : > { %1466 = vpow2.f32 %v917_v57  ;;  %1104 = vmatpush.bf16.msrb.mxu2 %v1032_v6  ;;  %v1463_v3 = vpop.eup %1462  ;;  %v954_v53 = vadd.f32 1.0, %v1461_v0 }
 0x1c3   : > { %1468 = vpow2.f32 %v907_v60  ;;  %v1465_v44 = vpop.eup %1464  ;;  %v953_v26 = vadd.f32 1.0, %v1463_v3  ;;  %v1047_v60 = vpop.permute.xlu0 %1046 }
 0x1c4   : > { %1470 = vpow2.f32 %v905_v8  ;;  %v952_v25 = vadd.f32 1.0, %v1465_v44 }
 0x1c5   : > { %1472 = vpow2.f32 %v903_v17 }
 0x1c6   : > { %1105 = vmatpush.bf16.msrb.mxu2 %v1031_v31  ;;  %1474 = vrcp.f32 %v955_v39  ;;  %v1141_v38 = vpop.permute.xlu1 %1140 }
 0x1c7   : > { %1476 = vrcp.f32 %v954_v53 }
 0x1c8   : > { %v1467_v33 = vpop.eup %1466 }
 0x1c9   : > { %v956_v28 = vadd.f32 1.0, %v1467_v33  ;;  %v1469_v30 = vpop.eup %1468  ;;  %1304 = vmatmul.msk.bf16.vlgmr.msrb.gmra.mxu2 %vm1069_vm3, %v1303_v41 }
 0x1ca   : > { %v1471_v23 = vpop.eup %1470  ;;  %v951_v32 = vadd.f32 1.0, %v1469_v30 }
 0x1cb   : > { %1478 = vrcp.f32 %v956_v28  ;;  %v1473_v12 = vpop.eup %1472  ;;  %v950_v4 = vadd.f32 1.0, %v1471_v23 }
 0x1cc   : > { %1480 = vrcp.f32 %v953_v26  ;;  %v1475_v34 = vpop.eup %1474  ;;  %v949_v13 = vadd.f32 1.0, %v1473_v12 }
 0x1cd   : > { %1482 = vrcp.f32 %v952_v25  ;;  %v1477_v15 = vpop.eup %1476  ;;  %v1005_v21 = vmul.f32 %v1475_v34, %v1907_v29 }
 0x1ce   : > { %1484 = vrcp.f32 %v951_v32  ;;  %v1004_v43 = vmul.f32 %v1477_v15, %v1901_v52 }
 0x1cf   : > { %1486 = vrcp.f32 %v950_v4 }
 0x1d0   : > { %1488 = vrcp.f32 %v949_v13  ;;  %v1162_v13 = vld [vmem:[%s1624_s14 + $0x7] sm:$0x3] }
 0x1d1   : > { %v1479_v5 = vpop.eup %1478 }
 0x1d2   : > { %v1006_v37 = vmul.f32 %v1479_v5, %v834_v45  ;;  %v1481_v40 = vpop.eup %1480  ;;  %v1134_v5 = vld [vmem:[%s2002_s7] sm:$0x1] }
 0x1d3   : > { %v1483_v47 = vpop.eup %1482  ;;  %v1003_v11 = vmul.f32 %v1481_v40, %v1904_v19 }
 0x1d4   : > { %v1028_v46 = vpack.c.bf16 %v1006_v37, %v1005_v21  ;;  %v1485_v42 = vpop.eup %1484  ;;  %v1002_v22 = vmul.f32 %v1483_v47, %v1912_v7  ;;  %v1298_v7 = vld [vmem:[%s2000_s5] sm:$0xf]  ;;  %v1163_v21 = vld [vmem:[%s1624_s14 + $0x5] sm:$0x3] }
 0x1d5   : > { %v1027_v55 = vpack.c.bf16 %v1004_v43, %v1003_v11  ;;  %v1487_v27 = vpop.eup %1486  ;;  %v1001_v29 = vmul.f32 %v1485_v42, %v1919_v50  ;;  %v1322_v50 = vld [vmem:[%s2000_s5 + $0x4] sm:$0xf0]  ;;  %v1164_v37 = vsub.f32 %v1162_v13, %v1163_v21 }
 0x1d6   : > { %1082 = vmatpush.bf16.msra.mxu1 %v1028_v46  ;;  %v1489_v45 = vpop.eup %1488  ;;  %v1000_v52 = vmul.f32 %v1487_v27, %v1926_v56  ;;  %v1299_v10 = vor.u32 %v1322_v50, %v1298_v7  ;;  %v1061_v56 = vunpack.c.l.b16 %v1022_v35 }
 0x1d7   : > { %v1026_v36 = vpack.c.bf16 %v1002_v22, %v1001_v29  ;;  %v999_v18 = vmul.f32 %v1489_v45, %v1932_v51  ;;  %1166 = vst [vmem:[%s369_s18 + $0x2] sm:$0x3] %v1164_v37 }
 0x1d8   : > { %v1065_v51 = vpack.c.b16 %v1061_v56, %v1061_v56 }
 0x1d9   : > { %1305 = vmatmul.msk.bf16.gmra.mxu2 %vm1069_vm3, %v1066_v54  ;;  %v1025_v19 = vpack.c.bf16 %v1000_v52, %v999_v18 }
 0x1da   : > { %1083 = vmatpush.bf16.msra.mxu1 %v1027_v55 }
 0x1de   : > { %1084 = vmatpush.bf16.msra.mxu1 %v1026_v36 }
 0x1e2   : > { %1085 = vmatpush.bf16.msra.mxu1 %v1025_v19 }
 0x1e6   : > { %1086 = vmatpush.bf16.msra.mxu1 %v1024_v58 }
 0x1ea   : > { %1087 = vmatpush.bf16.msra.mxu1 %v1023_v24 }
 0x1ed   : > { %1088 = vmatmul.bf16.vlgmr.msra.gmra.mxu1 %v1299_v10 }
 0x1fd   : > { %1093 = vmatmul.bf16.gmra.mxu1 %v1065_v51 }
 0x24c   : > { %v1107_v59 = vpop.f32.mrf.mxu2 }
 0x254   : > { %v1109_v48 = vpop.f32.mrf.mxu2 }
 0x25c   : > { %v1112_v49 = vpop.f32.mrf.mxu2 }
 0x264   : > { %v1114_v58 = vpop.f32.mrf.mxu2 }
 0x26a   : > { %v1089_v16 = vpop.f32.mrf.mxu1 }
 0x26b   : > { %v1090_v57 = vadd.f32 %v1089_v16, %v1042_v20 }
 0x26d   : > { %v1108_v8 = vadd.f32 %v1107_v59, %v1090_v57 }
 0x26f   : > { %v1116_v63 = vsub.f32 0.0, %v1108_v8 }
 0x271   : > { %v1119_v17 = vmul.f32 1.442695, %v1116_v63 }
 0x272   : > { %v1091_v61 = vpop.f32.mrf.mxu1 }
 0x273   : > { %v1092_v6 = vadd.f32 %v1091_v61, %v1047_v60 }
 0x275   : > { %v1110_v62 = vadd.f32 %v1109_v48, %v1092_v6 }
 0x277   : > { %v1117_v0 = vsub.f32 0.0, %v1110_v62 }
 0x279   : > { %v1121_v14 = vmul.f32 1.442695, %v1117_v0 }
 0x27a   : > { %v1094_v2 = vpop.f32.mrf.mxu1 }
 0x27b   : > { %v1095_v24 = vadd.f32 %v1094_v2, %v1052_v1  ;;  %1490 = vpow2.f32 %v1121_v14 }
 0x27c   : > { %1492 = vpow2.f32 %v1119_v17 }
 0x27d   : > { %v1113_v9 = vadd.f32 %v1112_v49, %v1095_v24 }
 0x27f   : > { %v1118_v39 = vsub.f32 0.0, %v1113_v9 }
 0x281   : > { %v1123_v31 = vmul.f32 1.442695, %v1118_v39  ;;  %v1491_v53 = vpop.eup %1490 }
 0x282   : > { %v1096_v3 = vpop.f32.mrf.mxu1  ;;  %v1493_v41 = vpop.eup %1492  ;;  %v1126_v33 = vadd.f32 1.0, %v1491_v53 }
 0x283   : > { %1494 = vpow2.f32 %v1123_v31  ;;  %v1125_v28 = vadd.f32 1.0, %v1493_v41 }
 0x289   : > { %v1495_v44 = vpop.eup %1494 }
 0x28a   : > { %v1127_v26 = vadd.f32 1.0, %v1495_v44 }
 0x28c   : > { %1496 = vrcp.f32 %v1127_v26 }
 0x28d   : > { %1498 = vrcp.f32 %v1126_v33 }
 0x28e   : > { %1500 = vrcp.f32 %v1125_v28 }
 0x292   : > { %v1497_v30 = vpop.eup %1496 }
 0x293   : > { %v1499_v25 = vpop.eup %1498  ;;  %v1133_v23 = vmul.f32 %v1497_v30, %v1113_v9 }
 0x294   : > { %v1501_v32 = vpop.eup %1500  ;;  %v1132_v34 = vmul.f32 %v1499_v25, %v1110_v62 }
 0x295   : > { %v1136_v12 = vpack.c.bf16 %v1133_v23, %v1133_v23  ;;  %v1131_v35 = vmul.f32 %v1501_v32, %v1108_v8 }
 0x297   : > { %v1147_v4 = vsel %vm793_vm0, %v1136_v12, 0  ;;  %v1135_v15 = vpack.c.bf16 %v1132_v34, %v1131_v35 }
 0x298   : > { %1155 = vmatpush.bf16.msrb.mxu3 %v1147_v4 }
 0x29c   : > { %1156 = vmatpush.bf16.msrb.mxu3 %v1135_v15 }
 0x29f   : > { %1306 = vmatmul.msk.bf16.vlgmr.msrb.gmra.mxu3 %vm753_vm1, %v1134_v5 }
 0x322   : > { %v1158_v40 = vpop.f32.mrf.mxu3 }
 0x323   : > { %v1159_v43 = vadd.f32 %v1158_v40, %v1141_v38 }
 0x325   : > { %1165 = vst [vmem:[%s369_s18] sm:$0x3] %v1159_v43 }
 0x32a   : > { %v1160_v46 = vpop.f32.mrf.mxu3 }
 0x32b PF: > { %p16_p9 = scmp.ge.s32.totalorder %s1598_s13, 4   ;;  %s2005_s30 = smov %s1520_s10 }
 0x32c   : > { %s2006_s10 = smov %s1607_s16  ;;  %s2007_s11 = smov %s1598_s13 }
 0x32d   :  { %18 = sbr.rel (!%p16_p9) target bundleno = 2 (0x2), region = 129 }

</bundles_post_ra>
